<compile_context>
chip_gen: v7x
topology: tpu7x:2x2x1
jax: 0.10.0
libtpu: 0.0.40
codegen_flags: <defaults>
</compile_context>

<pallas_src>
import jax
import jax.numpy as jnp
from jax.experimental import pallas as pl
from jax.experimental.pallas import tpu as pltpu


# ---------------------------------------------------------------------------
# Generation-aware VMEM budgeting
# ---------------------------------------------------------------------------
def _vmem_budget():
    try:
        cap = int(pltpu.get_tpu_info().vmem_capacity_bytes)
    except Exception:
        cap = 64 * 1024 * 1024  # conservative (v7x-sized) fallback
    tile_budget = min(cap // 2, 64 * 1024 * 1024)        # 32 MiB v7x, 64 MiB v5e/v6e
    vmem_limit = min((cap * 3) // 4, 96 * 1024 * 1024)   # 48 MiB v7x, 96 MiB v5e/v6e
    return tile_budget, vmem_limit


_MIN_GRID_STEPS = 4  # keep pipelining alive + shard across both v7x TensorCores


def _pick_row_tile(ho, batch, est_fn, budget):
    """Largest divisor TR of `ho` that fits the VMEM budget while keeping the
    grid at >= _MIN_GRID_STEPS total steps (DMA overlap + 2-TC sharding)."""
    fits = [t for t in range(1, ho + 1) if ho % t == 0 and est_fn(t) <= budget]
    if not fits:
        fits = [1]  # TODO(synk): fall back to non-divisor TR with a masked last tile
    enough = [t for t in fits if batch * (ho // t) >= _MIN_GRID_STEPS]
    return max(enough) if enough else max(fits)


# ---------------------------------------------------------------------------
# Kernels
# ---------------------------------------------------------------------------
def _shift_cols(p, wo):
    """out[k,:] = p[k-1,:] with rows where (k % wo == 0) zeroed.

    `p` is a flat (rows*wo, Cout) tile in row-major (row, col) order, so this
    implements the conv left-padding column shift (dest col j <- src col j-1,
    col 0 <- 0).  pltpu.roll uses the otherwise idle XLU slot instead of
    materializing a concatenated copy.
    """
    rolled = pltpu.roll(p, shift=1, axis=0)
    k = jax.lax.broadcasted_iota(jnp.int32, p.shape, 0)
    return jnp.where((k % wo) == 0, jnp.zeros_like(rolled), rolled)


def _conv3x3_s2_kernel(xm_ref, xh_ref, wp_ref, wl_ref, b_ref, o_ref, acc_ref):
    """3x3, stride-2, pad-1 conv for one (batch, row-tile) grid step.

    xm_ref : (TR, 2, Wo, 2*Cin)  rows [2*r*TR, 2*r*TR + 2*TR) of the reshaped
             NHWC input; [i, s, j, b*Cin + c] == x[2*(r*TR+i)+s, 2*j+b, c]
    xh_ref : (Wo, 2*Cin)         halo row 2*r*TR - 1 (unused for r == 0)
    wp_ref : (3, 2*Cin, Cout)    K-packed centre+right taps per ky
    wl_ref : (3, Cin, Cout)      left taps per ky
    b_ref  : (1, Cout)
    o_ref  : (TR, Wo, Cout)
    acc_ref: (TR, Wo, Cout) fp32 VMEM scratch accumulator
    """
    TR, Wo, Cout = o_ref.shape
    Cin2 = xm_ref.shape[-1]
    Cin = Cin2 // 2
    f32 = jnp.float32

    def mm(lhs, w):  # MXU matmul, fp32 accumulation, no forced multi-pass
        return jnp.dot(lhs, w, preferred_element_type=f32)

    # Parity slabs: [..., :Cin] = even input cols (kx=1), [..., Cin:] = odd (kx=2).
    flat_e = xm_ref[:, 0].reshape(TR * Wo, Cin2)   # even input rows (ky=1)
    flat_o = xm_ref[:, 1].reshape(TR * Wo, Cin2)   # odd  input rows (ky=2)

    # Unshifted centre+right taps, K-packed to 2*Cin, products summed
    # back-to-back so the MXU result buffer can accumulate (v7x MRB).
    main = mm(flat_e, wp_ref[1]) + mm(flat_o, wp_ref[2])
    # Left (kx=0) taps share a single post-MXU column shift via linearity.
    left = mm(flat_e[:, Cin:], wl_ref[1]) + mm(flat_o[:, Cin:], wl_ref[2])
    acc_ref[...] = (main + _shift_cols(left, Wo)).reshape(TR, Wo, Cout)

    # ky=0 taps for output rows 1..TR-1: previous odd input row inside the tile
    # (no wasted last-row matmul, no row concatenate).
    if TR > 1:
        prev = flat_o[: (TR - 1) * Wo]
        top = mm(prev, wp_ref[0])
        ltop = mm(prev[:, Cin:], wl_ref[0])
        acc_ref[1:] = acc_ref[1:] + (top + _shift_cols(ltop, Wo)).reshape(
            TR - 1, Wo, Cout)

    # ky=0 taps for output row 0 come from the halo row.  Skipped entirely on
    # the first row tile (zero padding): saves 2 matmuls and cannot propagate
    # non-finite garbage into row 0.
    @pl.when(pl.program_id(1) > 0)
    def _():
        h = xh_ref[...]                                        # (Wo, 2*Cin)
        hq = mm(h, wp_ref[0]) + _shift_cols(mm(h[:, Cin:], wl_ref[0]), Wo)
        acc_ref[0] = acc_ref[0] + hq

    bias = b_ref[...].astype(f32).reshape(1, 1, Cout)
    o_ref[...] = (acc_ref[...] + bias).astype(o_ref.dtype)


def _avgpool2x2_kernel(x_ref, o_ref):
    """2x2 stride-2 average pool for one (batch, row-tile) grid step."""
    C = o_ref.shape[-1]
    f32 = jnp.float32
    s = (x_ref[:, 0, :, :C].astype(f32) + x_ref[:, 0, :, C:].astype(f32)
         + x_ref[:, 1, :, :C].astype(f32) + x_ref[:, 1, :, C:].astype(f32))
    o_ref[...] = (s * 0.25).astype(o_ref.dtype)


# ---------------------------------------------------------------------------
# Channels-last entry points (no layout glue beyond a free bitcast reshape)
# ---------------------------------------------------------------------------
def downsample_conv2d_nhwc(x_nhwc, w_hwio, bias, *, out_dtype=None):
    out_dtype = out_dtype or x_nhwc.dtype
    B, H, W, C = x_nhwc.shape
    assert H % 2 == 0 and W % 2 == 0, "even spatial dims assumed"  # TODO(synk): odd sizes
    Cout = w_hwio.shape[-1]
    Ho, Wo = H // 2, W // 2
    in_esz = jnp.dtype(x_nhwc.dtype).itemsize
    out_esz = jnp.dtype(out_dtype).itemsize
    budget, vmem_limit = _vmem_budget()

    def est(tr):  # double-buffered operands + scratch + ~6 acc-sized live temps
        in_blk = tr * 2 * W * C * in_esz
        halo = W * C * in_esz
        wts = 9 * C * Cout * in_esz
        out_blk = tr * Wo * Cout * out_esz
        acc = tr * Wo * Cout * 4
        return 2 * (in_blk + halo + wts + out_blk) + 7 * acc

    TR = _pick_row_tile(Ho, B, est, budget)

    x_r = x_nhwc.reshape(B, Ho, 2, Wo, 2 * C)                 # free (bitcast) reshape
    # K-pack the (kx=1, kx=2) taps: matches the [even-col || odd-col] layout.
    w_pack = jnp.concatenate([w_hwio[:, 1], w_hwio[:, 2]], axis=1)   # (3, 2C, Cout)
    w_left = w_hwio[:, 0]                                            # (3, C, Cout)
    b2 = bias.reshape(1, Cout).astype(jnp.float32)

    # TODO(synk): single-buffer weights/bias (pipeline_mode=pl.Buffered(1)) to
    # reclaim ~9*C*Cout bytes of VMEM at very large channel counts (v7x).
    return pl.pallas_call(
        _conv3x3_s2_kernel,
        out_shape=jax.ShapeDtypeStruct((B, Ho, Wo, Cout), out_dtype),
        grid=(B, Ho // TR),
        in_specs=[
            pl.BlockSpec((None, TR, 2, Wo, 2 * C), lambda n, r: (n, r, 0, 0, 0)),
            # 1-row top halo: odd row of Ho-index r*TR - 1 (unused for r == 0)
            pl.BlockSpec((None, None, None, Wo, 2 * C),
                         lambda n, r: (n, jnp.maximum(r * TR - 1, 0), 1, 0, 0)),
            pl.BlockSpec((3, 2 * C, Cout), lambda n, r: (0, 0, 0)),
            pl.BlockSpec((3, C, Cout), lambda n, r: (0, 0, 0)),
            pl.BlockSpec((1, Cout), lambda n, r: (0, 0)),
        ],
        out_specs=pl.BlockSpec((None, TR, Wo, Cout), lambda n, r: (n, r, 0, 0)),
        scratch_shapes=[pltpu.VMEM((TR, Wo, Cout), jnp.float32)],
        compiler_params=pltpu.CompilerParams(
            dimension_semantics=("parallel", "parallel"),
            vmem_limit_bytes=vmem_limit),
    )(x_r, x_r, w_pack, w_left, b2)


def downsample_avgpool2d_nhwc(x_nhwc):
    B, H, W, C = x_nhwc.shape
    assert H % 2 == 0 and W % 2 == 0, "even spatial dims assumed"
    Ho, Wo = H // 2, W // 2
    esz = jnp.dtype(x_nhwc.dtype).itemsize
    budget, vmem_limit = _vmem_budget()

    def est(tr):
        in_blk = tr * 2 * W * C * esz
        out_blk = tr * Wo * C * esz
        return 2 * (in_blk + out_blk) + 2 * tr * Wo * C * 4

    TR = _pick_row_tile(Ho, B, est, budget)
    x_r = x_nhwc.reshape(B, Ho, 2, Wo, 2 * C)                 # free (bitcast) reshape

    return pl.pallas_call(
        _avgpool2x2_kernel,
        out_shape=jax.ShapeDtypeStruct((B, Ho, Wo, C), x_nhwc.dtype),
        grid=(B, Ho // TR),
        in_specs=[pl.BlockSpec((None, TR, 2, Wo, 2 * C),
                               lambda n, r: (n, r, 0, 0, 0))],
        out_specs=pl.BlockSpec((None, TR, Wo, C), lambda n, r: (n, r, 0, 0)),
        compiler_params=pltpu.CompilerParams(
            dimension_semantics=("parallel", "parallel"),
            vmem_limit_bytes=vmem_limit),
    )(x_r)


# ---------------------------------------------------------------------------
# PyTorch-layout wrappers (NCHW in/out, OIHW weights)
# ---------------------------------------------------------------------------
def downsample_conv2d(x_nchw, w_oihw, bias, *, compute_dtype=jnp.bfloat16):
    out_dtype = x_nchw.dtype
    cdt = compute_dtype if compute_dtype is not None else x_nchw.dtype
    # One fused layout op per direction, forced by the NCHW interface.
    # TODO(synk): channels-last models should call downsample_conv2d_nhwc directly.
    x_nhwc = jnp.transpose(x_nchw, (0, 2, 3, 1)).astype(cdt)
    w_hwio = jnp.transpose(w_oihw, (2, 3, 1, 0)).astype(cdt)      # (3,3,Cin,Cout)
    y = downsample_conv2d_nhwc(x_nhwc, w_hwio, bias, out_dtype=out_dtype)
    return jnp.transpose(y, (0, 3, 1, 2))


def downsample_avgpool2d(x_nchw):
    # TODO(synk): the pool is purely HBM-bound; channels-last callers should use
    # downsample_avgpool2d_nhwc directly and skip both transposes.
    x_nhwc = jnp.transpose(x_nchw, (0, 2, 3, 1))
    return jnp.transpose(downsample_avgpool2d_nhwc(x_nhwc), (0, 3, 1, 2))


# ---------------------------------------------------------------------------
# Module port
# ---------------------------------------------------------------------------
class Downsample:
    """JAX/Pallas port of guided_diffusion.unet.Downsample (dims=2)."""

    def __init__(self, channels, use_conv, dims=2, out_channels=None, key=None,
                 compute_dtype=jnp.bfloat16):
        assert dims == 2  # TODO(synk): dims=1 / dims=3 variants not implemented
        self.channels = channels
        self.out_channels = out_channels or channels
        self.use_conv = use_conv
        self.compute_dtype = compute_dtype  # bf16 default (fp32 MXU accumulate)
        if use_conv:
            key = jax.random.PRNGKey(0) if key is None else key
            kw, kb = jax.random.split(key)
            # deterministic synthetic init (conv weight OIHW, like nn.Conv2d)
            self.weight = 0.1 * jax.random.normal(
                kw, (self.out_channels, channels, 3, 3), jnp.float32)
            self.bias = 0.1 * jax.random.normal(kb, (self.out_channels,), jnp.float32)
        else:
            assert channels == self.out_channels

    def __call__(self, x):
        assert x.shape[1] == self.channels
        if self.use_conv:
            return downsample_conv2d(x, self.weight, self.bias,
                                     compute_dtype=self.compute_dtype)
        return downsample_avgpool2d(x)


# ---------------------------------------------------------------------------
# Demo / check
# ---------------------------------------------------------------------------
if __name__ == "__main__":
    key = jax.random.PRNGKey(0)
    kx, km = jax.random.split(key)
    x = jax.random.normal(kx, (2, 4, 16, 16), jnp.float32)     # NCHW like PyTorch

    ds_conv = Downsample(channels=4, use_conv=True, out_channels=8, key=km)
    ref = jax.lax.conv_general_dilated(
        x, ds_conv.weight, window_strides=(2, 2), padding=((1, 1), (1, 1)),
        dimension_numbers=("NCHW", "OIHW", "NCHW"),
        precision=jax.lax.Precision.HIGHEST,
    ) + ds_conv.bias.reshape(1, -1, 1, 1)

    # default bf16 compute (fp32 accumulate)
    y = jax.block_until_ready(ds_conv(x))
    assert y.shape == (2, 8, 8, 8), y.shape
    assert y.dtype == jnp.float32
    assert jnp.allclose(y, ref, rtol=5e-2, atol=5e-2), "conv (bf16) mismatch"

    # explicit fp32 compute path
    ds_f32 = Downsample(channels=4, use_conv=True, out_channels=8, key=km,
                        compute_dtype=jnp.float32)
    y32 = jax.block_until_ready(ds_f32(x))
    assert jnp.allclose(y32, ref, rtol=5e-2, atol=5e-2), "conv (fp32) mismatch"

    # use_conv=False path (avg pool 2x2, stride 2)
    ds_pool = Downsample(channels=4, use_conv=False)
    y2 = jax.block_until_ready(ds_pool(x))
    ref2 = x.reshape(2, 4, 8, 2, 8, 2).mean(axis=(3, 5))
    assert y2.shape == (2, 4, 8, 8), y2.shape
    assert jnp.allclose(y2, ref2, rtol=1e-5, atol=1e-5), "avgpool mismatch"

    print("KERNEL_OK")
</pallas_src>

<mosaic_0001>
module attributes {stable_mosaic.version = 11 : i64} {
  func.func @_conv3x3_s2_kernel(%arg0: i32, %arg1: i32, %arg2: memref<1x4x2x8x8xbf16, #tpu.memory_space<vmem>>, %arg3: memref<1x1x1x8x8xbf16, #tpu.memory_space<vmem>>, %arg4: memref<3x8x8xbf16, #tpu.memory_space<vmem>>, %arg5: memref<3x4x8xbf16, #tpu.memory_space<vmem>>, %arg6: memref<1x8xf32, #tpu.memory_space<vmem>>, %arg7: memref<1x4x8x8xf32, #tpu.memory_space<vmem>>, %arg8: memref<4x8x8xf32, #tpu.memory_space<vmem>>) attributes {dimension_semantics = [#tpu.dimension_semantics<parallel>, #tpu.dimension_semantics<parallel>], iteration_bounds = array<i64: 2, 2>, scalar_prefetch = 0 : i64, scratch_operands = 1 : i64, tpu.core_type = #tpu.core_type<tc>, window_params = [{transform_indices = @transform_0, window_bounds = array<i64: 1, 4, 2, 8, 8>}, {transform_indices = @transform_1, window_bounds = array<i64: 1, 1, 1, 8, 8>}, {pipeline_mode = #tpu.pipeline_mode<synchronous>, transform_indices = @transform_2, window_bounds = array<i64: 3, 8, 8>}, {pipeline_mode = #tpu.pipeline_mode<synchronous>, transform_indices = @transform_3, window_bounds = array<i64: 3, 4, 8>}, {pipeline_mode = #tpu.pipeline_mode<synchronous>, transform_indices = @transform_4, window_bounds = array<i64: 1, 8>}, {transform_indices = @transform_5, window_bounds = array<i64: 1, 4, 8, 8>}]} {
    %c0 = arith.constant 0 : index
    %c0_0 = arith.constant 0 : index
    %c0_1 = arith.constant 0 : index
    %c0_2 = arith.constant 0 : index
    %c0_3 = arith.constant 0 : index
    %0 = vector.load %arg2[%c0, %c0_0, %c0_1, %c0_2, %c0_3] : memref<1x4x2x8x8xbf16, #tpu.memory_space<vmem>>, vector<1x4x1x8x8xbf16>
    %1 = vector.shape_cast %0 : vector<1x4x1x8x8xbf16> to vector<4x8x8xbf16>
    %2 = vector.shape_cast %1 : vector<4x8x8xbf16> to vector<32x8xbf16>
    %c0_4 = arith.constant 0 : index
    %c0_5 = arith.constant 0 : index
    %c1 = arith.constant 1 : index
    %c0_6 = arith.constant 0 : index
    %c0_7 = arith.constant 0 : index
    %3 = vector.load %arg2[%c0_4, %c0_5, %c1, %c0_6, %c0_7] : memref<1x4x2x8x8xbf16, #tpu.memory_space<vmem>>, vector<1x4x1x8x8xbf16>
    %4 = vector.shape_cast %3 : vector<1x4x1x8x8xbf16> to vector<4x8x8xbf16>
    %5 = vector.shape_cast %4 : vector<4x8x8xbf16> to vector<32x8xbf16>
    %c1_8 = arith.constant 1 : index
    %c0_9 = arith.constant 0 : index
    %c0_10 = arith.constant 0 : index
    %6 = vector.load %arg4[%c1_8, %c0_9, %c0_10] : memref<3x8x8xbf16, #tpu.memory_space<vmem>>, vector<1x8x8xbf16>
    %7 = vector.shape_cast %6 : vector<1x8x8xbf16> to vector<8x8xbf16>
    %cst = arith.constant dense<0.000000e+00> : vector<32x8xf32>
    %8 = tpu.matmul %2, %7, %cst {dimension_numbers = #tpu.dot_dimension_numbers<[1], [0], [0], [1], [0, 0, 1, 1], [], []>} : vector<32x8xbf16>, vector<8x8xbf16>, vector<32x8xf32> -> vector<32x8xf32>
    %c2 = arith.constant 2 : index
    %c0_11 = arith.constant 0 : index
    %c0_12 = arith.constant 0 : index
    %9 = vector.load %arg4[%c2, %c0_11, %c0_12] : memref<3x8x8xbf16, #tpu.memory_space<vmem>>, vector<1x8x8xbf16>
    %10 = vector.shape_cast %9 : vector<1x8x8xbf16> to vector<8x8xbf16>
    %cst_13 = arith.constant dense<0.000000e+00> : vector<32x8xf32>
    %11 = tpu.matmul %5, %10, %cst_13 {dimension_numbers = #tpu.dot_dimension_numbers<[1], [0], [0], [1], [0, 0, 1, 1], [], []>} : vector<32x8xbf16>, vector<8x8xbf16>, vector<32x8xf32> -> vector<32x8xf32>
    %12 = arith.addf %8, %11 : vector<32x8xf32>
    %13 = vector.extract_strided_slice %2 {offsets = [0, 4], sizes = [32, 4], strides = [1, 1]} : vector<32x8xbf16> to vector<32x4xbf16>
    %c1_14 = arith.constant 1 : index
    %c0_15 = arith.constant 0 : index
    %c0_16 = arith.constant 0 : index
    %14 = vector.load %arg5[%c1_14, %c0_15, %c0_16] : memref<3x4x8xbf16, #tpu.memory_space<vmem>>, vector<1x4x8xbf16>
    %15 = vector.shape_cast %14 : vector<1x4x8xbf16> to vector<4x8xbf16>
    %cst_17 = arith.constant dense<0.000000e+00> : vector<32x8xf32>
    %16 = tpu.matmul %13, %15, %cst_17 {dimension_numbers = #tpu.dot_dimension_numbers<[1], [0], [0], [1], [0, 0, 1, 1], [], []>} : vector<32x4xbf16>, vector<4x8xbf16>, vector<32x8xf32> -> vector<32x8xf32>
    %17 = vector.extract_strided_slice %5 {offsets = [0, 4], sizes = [32, 4], strides = [1, 1]} : vector<32x8xbf16> to vector<32x4xbf16>
    %c2_18 = arith.constant 2 : index
    %c0_19 = arith.constant 0 : index
    %c0_20 = arith.constant 0 : index
    %18 = vector.load %arg5[%c2_18, %c0_19, %c0_20] : memref<3x4x8xbf16, #tpu.memory_space<vmem>>, vector<1x4x8xbf16>
    %19 = vector.shape_cast %18 : vector<1x4x8xbf16> to vector<4x8xbf16>
    %cst_21 = arith.constant dense<0.000000e+00> : vector<32x8xf32>
    %20 = tpu.matmul %17, %19, %cst_21 {dimension_numbers = #tpu.dot_dimension_numbers<[1], [0], [0], [1], [0, 0, 1, 1], [], []>} : vector<32x4xbf16>, vector<4x8xbf16>, vector<32x8xf32> -> vector<32x8xf32>
    %21 = arith.addf %16, %20 : vector<32x8xf32>
    %c1_i32 = arith.constant 1 : i32
    %22 = tpu.dynamic_rotate %21 by %c1_i32 dim 0 : vector<32x8xf32>, i32 -> vector<32x8xf32>
    %23 = tpu.iota {dimensions = array<i32: 0>} : vector<32x8xi32>
    %c8_i32 = arith.constant 8 : i32
    %c0_i32 = arith.constant 0 : i32
    %24 = arith.cmpi eq, %c8_i32, %c0_i32 : i32
    %c1_i32_22 = arith.constant 1 : i32
    %25 = arith.select %24, %c1_i32_22, %c8_i32 : i32
    %26 = vector.broadcast %25 : i32 to vector<32x8xi32>
    %27 = arith.remsi %23, %26 : vector<32x8xi32>
    %c0_i32_23 = arith.constant 0 : i32
    %28 = vector.broadcast %c0_i32_23 : i32 to vector<32x8xi32>
    %29 = arith.cmpi ne, %27, %28 : vector<32x8xi32>
    %c0_i32_24 = arith.constant 0 : i32
    %30 = vector.broadcast %c0_i32_24 : i32 to vector<32x8xi32>
    %31 = arith.cmpi slt, %27, %30 : vector<32x8xi32>
    %c0_i32_25 = arith.constant 0 : i32
    %32 = arith.cmpi slt, %25, %c0_i32_25 : i32
    %33 = vector.broadcast %32 : i1 to vector<32x8xi1>
    %34 = vector.broadcast %33 : vector<32x8xi1> to vector<32x8xi1>
    %35 = arith.xori %31, %34 : vector<32x8xi1>
    %36 = arith.andi %35, %29 : vector<32x8xi1>
    %37 = vector.broadcast %25 : i32 to vector<32x8xi32>
    %38 = arith.addi %27, %37 : vector<32x8xi32>
    %39 = arith.select %36, %38, %27 : vector<32x8xi1>, vector<32x8xi32>
    %c0_i32_26 = arith.constant 0 : i32
    %40 = vector.broadcast %c0_i32_26 : i32 to vector<32x8xi32>
    %41 = arith.cmpi eq, %39, %40 : vector<32x8xi32>
    %cst_27 = arith.constant 0.000000e+00 : f32
    %42 = vector.broadcast %cst_27 : f32 to vector<32x8xf32>
    %43 = arith.select %41, %42, %22 : vector<32x8xi1>, vector<32x8xf32>
    %44 = arith.addf %12, %43 : vector<32x8xf32>
    %45 = vector.shape_cast %44 : vector<32x8xf32> to vector<4x8x8xf32>
    %c0_28 = arith.constant 0 : index
    %c0_29 = arith.constant 0 : index
    %c0_30 = arith.constant 0 : index
    %46 = vector.load %arg8[%c0_28, %c0_29, %c0_30] : memref<4x8x8xf32, #tpu.memory_space<vmem>>, vector<4x8x8xf32>
    tpu.vector_store %arg8[%c0_28, %c0_29, %c0_30], %45 {strides = array<i32>} : memref<4x8x8xf32, #tpu.memory_space<vmem>>, vector<4x8x8xf32>,
    %47 = vector.extract_strided_slice %5 {offsets = [0, 0], sizes = [24, 8], strides = [1, 1]} : vector<32x8xbf16> to vector<24x8xbf16>
    %c0_31 = arith.constant 0 : index
    %c0_32 = arith.constant 0 : index
    %c0_33 = arith.constant 0 : index
    %48 = vector.load %arg4[%c0_31, %c0_32, %c0_33] : memref<3x8x8xbf16, #tpu.memory_space<vmem>>, vector<1x8x8xbf16>
    %49 = vector.shape_cast %48 : vector<1x8x8xbf16> to vector<8x8xbf16>
    %cst_34 = arith.constant dense<0.000000e+00> : vector<24x8xf32>
    %50 = tpu.matmul %47, %49, %cst_34 {dimension_numbers = #tpu.dot_dimension_numbers<[1], [0], [0], [1], [0, 0, 1, 1], [], []>} : vector<24x8xbf16>, vector<8x8xbf16>, vector<24x8xf32> -> vector<24x8xf32>
    %51 = vector.extract_strided_slice %47 {offsets = [0, 4], sizes = [24, 4], strides = [1, 1]} : vector<24x8xbf16> to vector<24x4xbf16>
    %c0_35 = arith.constant 0 : index
    %c0_36 = arith.constant 0 : index
    %c0_37 = arith.constant 0 : index
    %52 = vector.load %arg5[%c0_35, %c0_36, %c0_37] : memref<3x4x8xbf16, #tpu.memory_space<vmem>>, vector<1x4x8xbf16>
    %53 = vector.shape_cast %52 : vector<1x4x8xbf16> to vector<4x8xbf16>
    %cst_38 = arith.constant dense<0.000000e+00> : vector<24x8xf32>
    %54 = tpu.matmul %51, %53, %cst_38 {dimension_numbers = #tpu.dot_dimension_numbers<[1], [0], [0], [1], [0, 0, 1, 1], [], []>} : vector<24x4xbf16>, vector<4x8xbf16>, vector<24x8xf32> -> vector<24x8xf32>
    %c1_39 = arith.constant 1 : index
    %c0_40 = arith.constant 0 : index
    %c0_41 = arith.constant 0 : index
    %55 = vector.load %arg8[%c1_39, %c0_40, %c0_41] : memref<4x8x8xf32, #tpu.memory_space<vmem>>, vector<3x8x8xf32>
    %c1_i32_42 = arith.constant 1 : i32
    %56 = tpu.dynamic_rotate %54 by %c1_i32_42 dim 0 : vector<24x8xf32>, i32 -> vector<24x8xf32>
    %57 = tpu.iota {dimensions = array<i32: 0>} : vector<24x8xi32>
    %c8_i32_43 = arith.constant 8 : i32
    %c0_i32_44 = arith.constant 0 : i32
    %58 = arith.cmpi eq, %c8_i32_43, %c0_i32_44 : i32
    %c1_i32_45 = arith.constant 1 : i32
    %59 = arith.select %58, %c1_i32_45, %c8_i32_43 : i32
    %60 = vector.broadcast %59 : i32 to vector<24x8xi32>
    %61 = arith.remsi %57, %60 : vector<24x8xi32>
    %c0_i32_46 = arith.constant 0 : i32
    %62 = vector.broadcast %c0_i32_46 : i32 to vector<24x8xi32>
    %63 = arith.cmpi ne, %61, %62 : vector<24x8xi32>
    %c0_i32_47 = arith.constant 0 : i32
    %64 = vector.broadcast %c0_i32_47 : i32 to vector<24x8xi32>
    %65 = arith.cmpi slt, %61, %64 : vector<24x8xi32>
    %c0_i32_48 = arith.constant 0 : i32
    %66 = arith.cmpi slt, %59, %c0_i32_48 : i32
    %67 = vector.broadcast %66 : i1 to vector<24x8xi1>
    %68 = vector.broadcast %67 : vector<24x8xi1> to vector<24x8xi1>
    %69 = arith.xori %65, %68 : vector<24x8xi1>
    %70 = arith.andi %69, %63 : vector<24x8xi1>
    %71 = vector.broadcast %59 : i32 to vector<24x8xi32>
    %72 = arith.addi %61, %71 : vector<24x8xi32>
    %73 = arith.select %70, %72, %61 : vector<24x8xi1>, vector<24x8xi32>
    %c0_i32_49 = arith.constant 0 : i32
    %74 = vector.broadcast %c0_i32_49 : i32 to vector<24x8xi32>
    %75 = arith.cmpi eq, %73, %74 : vector<24x8xi32>
    %cst_50 = arith.constant 0.000000e+00 : f32
    %76 = vector.broadcast %cst_50 : f32 to vector<24x8xf32>
    %77 = arith.select %75, %76, %56 : vector<24x8xi1>, vector<24x8xf32>
    %78 = arith.addf %50, %77 : vector<24x8xf32>
    %79 = vector.shape_cast %78 : vector<24x8xf32> to vector<3x8x8xf32>
    %80 = arith.addf %55, %79 : vector<3x8x8xf32>
    %c1_51 = arith.constant 1 : index
    %c0_52 = arith.constant 0 : index
    %c0_53 = arith.constant 0 : index
    %81 = vector.load %arg8[%c1_51, %c0_52, %c0_53] : memref<4x8x8xf32, #tpu.memory_space<vmem>>, vector<3x8x8xf32>
    tpu.vector_store %arg8[%c1_51, %c0_52, %c0_53], %80 {strides = array<i32>} : memref<4x8x8xf32, #tpu.memory_space<vmem>>, vector<3x8x8xf32>,
    %c0_i32_54 = arith.constant 0 : i32
    %82 = arith.cmpi sgt, %arg1, %c0_i32_54 : i32
    %83 = arith.extui %82 : i1 to i32
    %c0_i32_55 = arith.constant 0 : i32
    %84 = arith.cmpi ne, %83, %c0_i32_55 : i32
    scf.if %84 {
      %c0_65 = arith.constant 0 : index
      %c0_66 = arith.constant 0 : index
      %c0_67 = arith.constant 0 : index
      %c0_68 = arith.constant 0 : index
      %c0_69 = arith.constant 0 : index
      %93 = vector.load %arg3[%c0_65, %c0_66, %c0_67, %c0_68, %c0_69] : memref<1x1x1x8x8xbf16, #tpu.memory_space<vmem>>, vector<1x1x1x8x8xbf16>
      %94 = vector.shape_cast %93 : vector<1x1x1x8x8xbf16> to vector<8x8xbf16>
      %c0_70 = arith.constant 0 : index
      %c0_71 = arith.constant 0 : index
      %c0_72 = arith.constant 0 : index
      %95 = vector.load %arg4[%c0_70, %c0_71, %c0_72] : memref<3x8x8xbf16, #tpu.memory_space<vmem>>, vector<1x8x8xbf16>
      %96 = vector.shape_cast %95 : vector<1x8x8xbf16> to vector<8x8xbf16>
      %cst_73 = arith.constant dense<0.000000e+00> : vector<8x8xf32>
      %97 = tpu.matmul %94, %96, %cst_73 {dimension_numbers = #tpu.dot_dimension_numbers<[1], [0], [0], [1], [0, 0, 1, 1], [], []>} : vector<8x8xbf16>, vector<8x8xbf16>, vector<8x8xf32> -> vector<8x8xf32>
      %98 = vector.extract_strided_slice %94 {offsets = [0, 4], sizes = [8, 4], strides = [1, 1]} : vector<8x8xbf16> to vector<8x4xbf16>
      %c0_74 = arith.constant 0 : index
      %c0_75 = arith.constant 0 : index
      %c0_76 = arith.constant 0 : index
      %99 = vector.load %arg5[%c0_74, %c0_75, %c0_76] : memref<3x4x8xbf16, #tpu.memory_space<vmem>>, vector<1x4x8xbf16>
      %100 = vector.shape_cast %99 : vector<1x4x8xbf16> to vector<4x8xbf16>
      %cst_77 = arith.constant dense<0.000000e+00> : vector<8x8xf32>
      %101 = tpu.matmul %98, %100, %cst_77 {dimension_numbers = #tpu.dot_dimension_numbers<[1], [0], [0], [1], [0, 0, 1, 1], [], []>} : vector<8x4xbf16>, vector<4x8xbf16>, vector<8x8xf32> -> vector<8x8xf32>
      %c1_i32_78 = arith.constant 1 : i32
      %102 = tpu.dynamic_rotate %101 by %c1_i32_78 dim 0 : vector<8x8xf32>, i32 -> vector<8x8xf32>
      %103 = tpu.iota {dimensions = array<i32: 0>} : vector<8x8xi32>
      %c8_i32_79 = arith.constant 8 : i32
      %c0_i32_80 = arith.constant 0 : i32
      %104 = arith.cmpi eq, %c8_i32_79, %c0_i32_80 : i32
      %c1_i32_81 = arith.constant 1 : i32
      %105 = arith.select %104, %c1_i32_81, %c8_i32_79 : i32
      %106 = vector.broadcast %105 : i32 to vector<8x8xi32>
      %107 = arith.remsi %103, %106 : vector<8x8xi32>
      %c0_i32_82 = arith.constant 0 : i32
      %108 = vector.broadcast %c0_i32_82 : i32 to vector<8x8xi32>
      %109 = arith.cmpi ne, %107, %108 : vector<8x8xi32>
      %c0_i32_83 = arith.constant 0 : i32
      %110 = vector.broadcast %c0_i32_83 : i32 to vector<8x8xi32>
      %111 = arith.cmpi slt, %107, %110 : vector<8x8xi32>
      %c0_i32_84 = arith.constant 0 : i32
      %112 = arith.cmpi slt, %105, %c0_i32_84 : i32
      %113 = vector.broadcast %112 : i1 to vector<8x8xi1>
      %114 = vector.broadcast %113 : vector<8x8xi1> to vector<8x8xi1>
      %115 = arith.xori %111, %114 : vector<8x8xi1>
      %116 = arith.andi %115, %109 : vector<8x8xi1>
      %117 = vector.broadcast %105 : i32 to vector<8x8xi32>
      %118 = arith.addi %107, %117 : vector<8x8xi32>
      %119 = arith.select %116, %118, %107 : vector<8x8xi1>, vector<8x8xi32>
      %c0_i32_85 = arith.constant 0 : i32
      %120 = vector.broadcast %c0_i32_85 : i32 to vector<8x8xi32>
      %121 = arith.cmpi eq, %119, %120 : vector<8x8xi32>
      %cst_86 = arith.constant 0.000000e+00 : f32
      %122 = vector.broadcast %cst_86 : f32 to vector<8x8xf32>
      %123 = arith.select %121, %122, %102 : vector<8x8xi1>, vector<8x8xf32>
      %124 = arith.addf %97, %123 : vector<8x8xf32>
      %c0_87 = arith.constant 0 : index
      %c0_88 = arith.constant 0 : index
      %c0_89 = arith.constant 0 : index
      %125 = vector.load %arg8[%c0_87, %c0_88, %c0_89] : memref<4x8x8xf32, #tpu.memory_space<vmem>>, vector<1x8x8xf32>
      %126 = vector.shape_cast %125 : vector<1x8x8xf32> to vector<8x8xf32>
      %127 = arith.addf %126, %124 : vector<8x8xf32>
      %c0_90 = arith.constant 0 : index
      %c0_91 = arith.constant 0 : index
      %c0_92 = arith.constant 0 : index
      %128 = vector.load %arg8[%c0_90, %c0_91, %c0_92] : memref<4x8x8xf32, #tpu.memory_space<vmem>>, vector<1x8x8xf32>
      %129 = vector.shape_cast %128 : vector<1x8x8xf32> to vector<8x8xf32>
      %130 = vector.shape_cast %127 : vector<8x8xf32> to vector<1x8x8xf32>
      tpu.vector_store %arg8[%c0_90, %c0_91, %c0_92], %130 {strides = array<i32>} : memref<4x8x8xf32, #tpu.memory_space<vmem>>, vector<1x8x8xf32>,
    } else {
    }
    %c0_56 = arith.constant 0 : index
    %c0_57 = arith.constant 0 : index
    %85 = vector.load %arg6[%c0_56, %c0_57] : memref<1x8xf32, #tpu.memory_space<vmem>>, vector<1x8xf32>
    %86 = vector.shape_cast %85 : vector<1x8xf32> to vector<1x1x8xf32>
    %c0_58 = arith.constant 0 : index
    %c0_59 = arith.constant 0 : index
    %c0_60 = arith.constant 0 : index
    %87 = vector.load %arg8[%c0_58, %c0_59, %c0_60] : memref<4x8x8xf32, #tpu.memory_space<vmem>>, vector<4x8x8xf32>
    %88 = vector.broadcast %86 : vector<1x1x8xf32> to vector<4x8x8xf32>
    %89 = arith.addf %87, %88 : vector<4x8x8xf32>
    %c0_61 = arith.constant 0 : index
    %c0_62 = arith.constant 0 : index
    %c0_63 = arith.constant 0 : index
    %c0_64 = arith.constant 0 : index
    %90 = vector.load %arg7[%c0_61, %c0_62, %c0_63, %c0_64] : memref<1x4x8x8xf32, #tpu.memory_space<vmem>>, vector<1x4x8x8xf32>
    %91 = vector.shape_cast %90 : vector<1x4x8x8xf32> to vector<4x8x8xf32>
    %92 = vector.shape_cast %89 : vector<4x8x8xf32> to vector<1x4x8x8xf32>
    tpu.vector_store %arg7[%c0_61, %c0_62, %c0_63, %c0_64], %92 {strides = array<i32>} : memref<1x4x8x8xf32, #tpu.memory_space<vmem>>, vector<1x4x8x8xf32>,
    return
  }
  func.func @transform_0(%arg0: i32, %arg1: i32) -> (i32, i32, i32, i32, i32) {
    %c0_i32 = arith.constant 0 : i32
    %c0_i32_0 = arith.constant 0 : i32
    %c0_i32_1 = arith.constant 0 : i32
    %c0_i32_2 = arith.constant 0 : i32
    return %arg0, %arg1, %c0_i32, %c0_i32_0, %c0_i32_1 : i32, i32, i32, i32, i32
  }
  func.func @transform_1(%arg0: i32, %arg1: i32) -> (i32, i32, i32, i32, i32) {
    %c4_i32 = arith.constant 4 : i32
    %0 = arith.muli %arg1, %c4_i32 : i32
    %c1_i32 = arith.constant 1 : i32
    %1 = arith.subi %0, %c1_i32 : i32
    %c0_i32 = arith.constant 0 : i32
    %2 = arith.maxsi %1, %c0_i32 : i32
    %c1_i32_0 = arith.constant 1 : i32
    %c0_i32_1 = arith.constant 0 : i32
    %c0_i32_2 = arith.constant 0 : i32
    %c0_i32_3 = arith.constant 0 : i32
    return %arg0, %2, %c1_i32_0, %c0_i32_1, %c0_i32_2 : i32, i32, i32, i32, i32
  }
  func.func @transform_2(%arg0: i32, %arg1: i32) -> (i32, i32, i32) {
    %c0_i32 = arith.constant 0 : i32
    %c0_i32_0 = arith.constant 0 : i32
    %c0_i32_1 = arith.constant 0 : i32
    %c0_i32_2 = arith.constant 0 : i32
    return %c0_i32, %c0_i32_0, %c0_i32_1 : i32, i32, i32
  }
  func.func @transform_3(%arg0: i32, %arg1: i32) -> (i32, i32, i32) {
    %c0_i32 = arith.constant 0 : i32
    %c0_i32_0 = arith.constant 0 : i32
    %c0_i32_1 = arith.constant 0 : i32
    %c0_i32_2 = arith.constant 0 : i32
    return %c0_i32, %c0_i32_0, %c0_i32_1 : i32, i32, i32
  }
  func.func @transform_4(%arg0: i32, %arg1: i32) -> (i32, i32) {
    %c0_i32 = arith.constant 0 : i32
    %c0_i32_0 = arith.constant 0 : i32
    %c0_i32_1 = arith.constant 0 : i32
    return %c0_i32, %c0_i32_0 : i32, i32
  }
  func.func @transform_5(%arg0: i32, %arg1: i32) -> (i32, i32, i32, i32) {
    %c0_i32 = arith.constant 0 : i32
    %c0_i32_0 = arith.constant 0 : i32
    %c0_i32_1 = arith.constant 0 : i32
    return %arg0, %arg1, %c0_i32, %c0_i32_0 : i32, i32, i32, i32
  }
}

</mosaic_0001>

<bundles_post_ra>
// kernel: tpu_custom_call.1
= control target key start
LH: loop header
LB: loop body
LE: loop exit
PB: predicated region body
PF: predicated region fallthrough
CT: control target
= control target key end

     0   :  { %s2085_s0 = inlined_call_operand.hbm [shape: bf16[2,8,2,8,8], index: 0, kind: input, shape index: {}]   ;;  %s2086_s1 = inlined_call_operand.hbm [shape: bf16[2,8,2,8,8], index: 1, kind: input, shape index: {}]   ;;  %s2087_s2 = inlined_call_operand.hbm [shape: bf16[3,8,8], index: 2, kind: input, shape index: {}]   ;;  %s2088_s3 = inlined_call_operand.vmem [shape: bf16[3,4,8], index: 3, kind: input, shape index: {}]   ;;  %s2089_s4 = inlined_call_operand.vmem [shape: f32[1,8], index: 4, kind: input, shape index: {}]   ;;  %s2090_s5 = inlined_call_operand.hbm [shape: f32[2,8,8,8], index: 5, kind: output, shape index: {}]  }
   0x1   :  { %2109 = sst [smem:[#allocation23_spill]] %s2085_s0 }
   0x2   :  { %2110 = sst [smem:[#allocation24_spill]] %s2087_s2 }
   0x3   :  { %2111 = sst [smem:[#allocation25_spill]] %s2090_s5 }
   0x4   :  { %10 = vsyncpa [#allocation4], 0 }
   0x5   :  { %12 = vsyncpa [#allocation4 + $0x1], 0 }
   0x6   :  { %13 = vsyncpa [#allocation7], 0 }
   0x7   :  { %15 = vsyncpa [#allocation7 + $0x1], 0 }
   0x8   :  { %16 = vsyncpa [#allocation5], 0 }
   0x9   :  { %18 = vsyncpa [#allocation5 + $0x1], 0  ;;  %s1638_s18 = smov 0   ;;  %s1640_s19 = smov 0  }
   0xa   :  { %s1642_s20 = smov 0   ;;  %s1644_s21 = smov 0  }
   0xb   :  { %s1646_s22 = smov 0   ;;  %s1648_s23 = smov 0  }
   0xc   :  { %s1650_s24 = smov 0   ;;  %s1652_s25 = smov 0  }
   0xd   :  { %s1654_s26 = smov 0   ;;  %s1656_s27 = smov 0  }
   0xe   :  { %s1658_s28 = smov 0  }
   0xf LB: > { %2112 = sst [smem:[#allocation14_spill]] %s1566_s21  ;;  %s1694_s29 = sadd.s32 4294967295, %s1594_s28   ;;  %s1594_s28 = sphi %s1658_s28, %s24_s28   ;;  %s1590_s27 = sphi %s1656_s27, %s2168_s27   ;;  %s1586_s26 = sphi %s1654_s26, %s2160_s26   ;;  %s1582_s25 = sphi %s1652_s25, %s2167_s25   ;;  %s1578_s24 = sphi %s1650_s24, %s2159_s24   ;;  %s1574_s23 = sphi %s1648_s23, %s2158_s23   ;;  %s1570_s22 = sphi %s1646_s22, %s2166_s22   ;;  %s1566_s21 = sphi %s1644_s21, %s2165_s21   ;;  %s1562_s20 = sphi %s1642_s20, %s2164_s20   ;;  %s1558_s19 = sphi %s1640_s19, %s2163_s19   ;;  %s1554_s18 = sphi %s1638_s18, %s2162_s18  }
  0x10   : > { %2113 = sst [smem:[#allocation15_spill]] %s1574_s23  ;;  %s1100_s30 = sadd.s32 4294967294, %s1594_s28  }
  0x11   : > { %2114 = sst [smem:[#allocation16_spill]] %s1582_s25  ;;  %p58_p0 = scmp.ne.s32.totalorder %s1570_s22, %s1566_s21 }
  0x12   : > { %2115 = sst [smem:[#allocation17_spill]] %s1586_s26  ;;  %p2091_p1 = scmp.eq.s32.totalorder %s1694_s29, 0 }
  0x13   : > { %p189_p2 = scmp.eq.s32.totalorder %s1100_s30, 3  ;;  %p1105_p4 = scmp.ge.s32.totalorder %s1594_s28, 1 }
  0x14   : > { %p1702_p3 = por %p2091_p1, %p58_p0  ;;  %p196_p6 = scmp.lt.s32.totalorder %s1594_s28, 5 }
  0x15   : > { %p1707_p5 = por %p189_p2, %p58_p0  ;;  %s1596_s9 = smov [#allocation8]  }
  0x16   : > { %s2116_s6 = scalar_select %p1702_p3, 1, 0 }
  0x17   : > { %s2117_s7 = scalar_select %p1707_p5, 1, 0 }
  0x18   : > { %p1712_p7 = pnand %p1105_p4, %p196_p6  ;;  %s208_s10 = sshll.u32 %s1596_s9, 4  ;;  %s209_s10 = int_to_ptr.vmem [resolvable:$true] %s208_s10 }
  0x19   : > { %2118 = sst [smem:[#allocation18_spill]] %s2117_s7  ;;  %s2121_s2 = sld [smem:[#allocation24_spill]] }
  0x1a   : > { %s2119_s8 = scalar_select %p1712_p7, 1, 0 }
  0x1b   : > { %p1253_p9 = pneg %p1712_p7 }
  0x1d   : > { %p1721_p10 = pnand %p1253_p9, %p2091_p1 }
  0x1f   : > { %s1375_s14 = scalar_lea.hbm %s2121_s2, 192  ;;  %p1377_p12 = pneg %p1721_p10 }
  0x20   : > { %p1376_p11 = scmp.ne.s32.totalorder %s2121_s2, %s1375_s14  ;;  %p1382_p2 = scmp.lt.u32.totalorder %s1375_s14, %s2121_s2 }
  0x22   : > { %p1378_p13 = pnand %p1377_p12, %p1376_p11 }
  0x24   : > { %p1379_p0 = pneg %p1378_p13 }
  0x26   : > { %p1384_p4 = pnand %p1382_p2, %p1379_p0 }
  0x28   : > { %1387 = shalt.err (!%p1384_p4)
}
  0x29   : > { %s1388_s9 = scalar_lea.vmem %s209_s10, 192  ;;  %p1396_p8 = scmp.lt.s32.totalorder %s209_s10, %s209_s10 }
  0x2a   : > { %p1389_p6 = scmp.ne.s32.totalorder %s209_s10, %s1388_s9  ;;  %p1397_p5 = scmp.lt.s32.totalorder %s1388_s9, %s1388_s9 }
  0x2c   : > { %p1391_p9 = pnand %p1389_p6, %p1377_p12  ;;  %p1398_p3 = por %p1397_p5, %p1396_p8 }
  0x2e   : > { %p1392_p1 = pneg %p1391_p9 }
  0x30   : > { %p1399_p7 = pnand %p1398_p3, %p1392_p1 }
  0x32   : > { %1402 = shalt.err (!%p1399_p7)
}
  0x33   : > { %s2095_s12 = smov 64   ;;  %s2096_s13 = smov 4  }
  0x34   : > { %1256 = dma.hbm_to_vmem [thread:$0]  (!%p1721_p10), %s2121_s2, 192, %s209_s10, [#allocation7], %s2095_s12, %s2095_s12, %s2096_s13  }
  0x35   : > { %p52_p1 = scmp.ne.s32.totalorder %s1574_s23, %s1570_s22  ;;  %p2100_p3 = scmp.eq.s32.totalorder %s1594_s28, 0 }
  0x36   : > { %p2099_p5 = scmp.lt.s32.totalorder %s1594_s28, 4  ;;  %p2122_p7 = scmp.eq.s32.totalorder %s1694_s29, 3 }
  0x37   : > { %s228_s30 = sand.u32 1, %s1574_s23   ;;  %p54_p11 = por %p2100_p3, %p52_p1 }
  0x38   : > { %p1751_p8 = por %p2122_p7, %p52_p1  ;;  %s1108_s11 = sshll.u32 %s228_s30, 5 }
  0x39   : > { %s1158_s9 = sshll.u32 %s1586_s26, 3  ;;  %s2098_s7 = sshll.u32 %s1590_s27, 4 }
  0x3a   : > { %s2123_s17 = scalar_select %p1751_p8, 1, 0 }
  0x3b   : > { %s239_s14 = sadd.s32 %s1158_s9, %s2098_s7  ;;  %s232_s10 = scalar_lea.vmem [#allocation3], %s1108_s11 }
  0x3c   : > { %2124 = sst [smem:[#allocation19_spill]] %s2123_s17  ;;  %s242_s15 = sshll.u32 %s232_s10, 4  ;;  %s1762_s15 = int_to_ptr.vmem [resolvable:$true] %s242_s15 }
  0x3d   : > { %s1112_s16 = sshll.u32 %s239_s14, 6  ;;  %s2125_s0 = sld [smem:[#allocation23_spill]] }
  0x3e   : > { %p1771_p10 = pnand %p2099_p5, %p54_p11  ;;  %s45_s11 = sadd.s32 1, %s1574_s23 }
  0x3f   : > { %s1776_s9 = scalar_lea.sflag [#allocation4], %s228_s30 }
  0x40   : > { %p1405_p13 = pneg %p1771_p10 }
  0x43   : > { %s1767_s2 = scalar_lea.hbm %s2125_s0, %s1112_s16  ;;  %s1408_s16 = scalar_lea.hbm %s2125_s0, 2048 }
  0x44   : > { %s1403_s14 = scalar_lea.hbm %s1767_s2, 512  ;;  %p1409_p4 = scmp.lt.u32.totalorder %s1767_s2, %s2125_s0 }
  0x45   : > { %p1404_p12 = scmp.ne.s32.totalorder %s1767_s2, %s1403_s14  ;;  %p1410_p6 = scmp.lt.u32.totalorder %s1408_s16, %s1403_s14 }
  0x46   : > { %p1412_p1 = scmp.lt.u32.totalorder %s1403_s14, %s1767_s2 }
  0x47   : > { %p1406_p0 = pnand %p1405_p13, %p1404_p12  ;;  %p1411_p9 = por %p1410_p6, %p1409_p4 }
  0x49   : > { %p1407_p2 = pneg %p1406_p0  ;;  %p1413_p7 = por %p1412_p1, %p1411_p9 }
  0x4b   : > { %p1414_p11 = pnand %p1413_p7, %p1407_p2 }
  0x4d   : > { %1417 = shalt.err (!%p1414_p11)
}
  0x4e   : > { %s1418_s30 = scalar_lea.vmem %s1762_s15, 512  ;;  %s1599_s12 = smov [#allocation3]  }
  0x4f   : > { %p1419_p12 = scmp.ne.s32.totalorder %s1762_s15, %s1418_s30  ;;  %s1423_s13 = sshll.u32 %s1599_s12, 4  ;;  %s1424_s13 = int_to_ptr.vmem [resolvable:$false] %s1423_s13 }
  0x50   : > { %s1425_s7 = scalar_lea.vmem %s1424_s13, 1024  ;;  %p1426_p3 = scmp.lt.s32.totalorder %s1762_s15, %s1424_s13 }
  0x51   : > { %p1421_p0 = pnand %p1419_p12, %p1405_p13  ;;  %p1427_p4 = scmp.lt.s32.totalorder %s1425_s7, %s1418_s30 }
  0x53   : > { %p1422_p5 = pneg %p1421_p0  ;;  %p1428_p6 = por %p1427_p4, %p1426_p3 }
  0x55   : > { %p1429_p9 = pnand %p1428_p6, %p1422_p5 }
  0x57   : > { %1432 = shalt.err (!%p1429_p9)
}
  0x58   : > { %s2127_s14 = smov 4   ;;  %s2128_s16 = smov 64  }
  0x59   : > { %1260 = dma.hbm_to_vmem [thread:$0]  (!%p1771_p10), %s1767_s2, 512, %s1762_s15, %s1776_s9, %s2128_s16, %s2128_s16, %s2127_s14  }
  0x5a   : > { %s33_s10 = sadd.s32 1, %s1586_s26  ;;  %s1101_s30 = sshll.u32 %s1586_s26, 2 }
  0x5b   : > { %p34_p3 = scmp.ge.s32.totalorder %s33_s10, 2  ;;  %s1102_s21 = sadd.s32 4294967295, %s1101_s30 }
  0x5c   : > { %s2130_s12 = sadd.s32 1, %s1590_s27  ;;  %p70_p5 = scmp.gt.s32.totalorder %s1102_s21, 0 }
  0x5d   : > { %s2170_s10 = smov (%p34_p3, %s33_s10), 0  ;;  %s2172_s12 = smov (!%p34_p3, %s2130_s12), %s1590_s27 }
  0x5e   : > { %2129 = sst [smem:[#allocation20_spill]] %s2170_s10  ;;  %s41_s13 = ssub.s32 %s1586_s26, %s2170_s10 }
  0x5f   : > { %p38_p10 = scmp.ge.s32.totalorder %s2172_s12, 2  ;;  %s1103_s2 = sshll.u32 %s2170_s10, 2 }
  0x60   : > { %s2174_s21 = smov (!%p70_p5, %s1102_s21), 0  ;;  %s1104_s15 = sadd.s32 4294967295, %s1103_s2 }
  0x61   : > { %s2176_s12 = smov (%p38_p10, %s2172_s12), 0  ;;  %s81_s9 = sadd.s32 1, %s1562_s20 }
  0x62   : > { %2131 = sst [smem:[#allocation21_spill]] %s2176_s12  ;;  %s40_s7 = ssub.s32 %s1590_s27, %s2176_s12 }
  0x63   : > { %p74_p13 = scmp.gt.s32.totalorder %s1104_s15, 0  ;;  %s42_s14 = sor.u32 %s41_s13, %s40_s7 }
  0x64   : > { %p88_p2 = scmp.ne.s32.totalorder %s1562_s20, %s1558_s19  ;;  %p43_p1 = scmp.eq.s32.totalorder %s42_s14, 0 }
  0x65   : > { %p94_p7 = scmp.ne.s32.totalorder %s1558_s19, %s1554_s18  ;;  %s2178_s15 = smov (!%p74_p13, %s1104_s15), 0 }
  0x66   : > { %s1829_s16 = scalar_select %p43_p1, %s1574_s23, %s45_s11  }
  0x67   : > { %s77_s30 = ssub.s32 %s2174_s21, %s2178_s15  ;;  %p2133_p11 = scmp.eq.s32.totalorder %s1694_s29, 0 }
  0x68   : > { %2132 = sst [smem:[#allocation22_spill]] %s1829_s16  ;;  %s78_s2 = sor.u32 %s77_s30, %s40_s7 }
  0x69   : > { %p1833_p12 = por %p94_p7, %p2133_p11  ;;  %p2135_p0 = scmp.eq.s32.totalorder %s1594_s28, 0 }
  0x6a   : > { %p79_p6 = scmp.eq.s32.totalorder %s78_s2, 0  ;;  %s252_s18 = sand.u32 1, %s1594_s28  }
  0x6b   : > { %p1839_p4 = por %p88_p2, %p2135_p0  ;;  %s254_s13 = sand.u32 1, %s1562_s20  }
  0x6c   : > { %s1116_s14 = sshll.u32 %s2174_s21, 1  ;;  %s1113_s15 = sshll.u32 %s254_s13, 2 }
  0x6d   : > { %s1846_s11 = scalar_select %p79_p6, %s1562_s20, %s81_s9  }
  0x6e   : > { %s2137_s10 = sshll.u32 %s1590_s27, 4  ;;  %s256_s30 = scalar_lea.vmem [#allocation6], %s1113_s15 }
  0x6f   : > { %s1016_s26 = sadd.s32 %s1116_s14, %s2137_s10  ;;  %s271_s17 = sshll.u32 %s256_s30, 4  ;;  %s1855_s17 = int_to_ptr.vmem [resolvable:$true] %s271_s17 }
  0x70   : > { %s1118_s16 = sshll.u32 %s1016_s26, 6  ;;  %p2138_p9 = scmp.lt.s32.totalorder %s1594_s28, 4 }
  0x71   : > { %s1018_s7 = scalar_lea.hbm %s2086_s1, %s1118_s16  ;;  %s253_s26 = scalar_lea.sflag [#allocation7], %s252_s18 }
  0x72   : > { %s1853_s25 = scalar_lea.hbm %s1018_s7, 64  ;;  %p1861_p3 = pnand %p2138_p9, %p1839_p4 }
  0x73   : > { %s1463_s5 = scalar_lea.hbm %s1018_s7, 128  ;;  %s1438_s12 = scalar_lea.hbm %s2086_s1, 2048 }
  0x74   : > { %p1434_p5 = scmp.ne.s32.totalorder %s1853_s25, %s1463_s5  ;;  %p1435_p10 = pneg %p1861_p3 }
  0x75   : > { %p1439_p1 = scmp.lt.u32.totalorder %s1853_s25, %s2086_s1  ;;  %p1440_p7 = scmp.lt.u32.totalorder %s1438_s12, %s1463_s5 }
  0x76   : > { %p1436_p13 = pnand %p1435_p10, %p1434_p5  ;;  %p1442_p0 = scmp.lt.u32.totalorder %s1463_s5, %s1853_s25 }
  0x77   : > { %p1441_p11 = por %p1440_p7, %p1439_p1 }
  0x78   : > { %p1437_p2 = pneg %p1436_p13 }
  0x79   : > { %p1443_p4 = por %p1442_p0, %p1441_p11 }
  0x7b   : > { %p1444_p6 = pnand %p1443_p4, %p1437_p2 }
  0x7d   : > { %1447 = shalt.err (!%p1444_p6)
}
  0x7e   : > { %s1448_s2 = scalar_lea.vmem %s1855_s17, 64  ;;  %s1600_s18 = smov [#allocation6]  }
  0x7f   : > { %p1449_p9 = scmp.ne.s32.totalorder %s1855_s17, %s1448_s2  ;;  %s1453_s13 = sshll.u32 %s1600_s18, 4  ;;  %s1454_s13 = int_to_ptr.vmem [resolvable:$false] %s1453_s13 }
  0x80   : > { %s1455_s14 = scalar_lea.vmem %s1454_s13, 128  ;;  %p1456_p8 = scmp.lt.s32.totalorder %s1855_s17, %s1454_s13 }
  0x81   : > { %p1451_p5 = pnand %p1449_p9, %p1435_p10  ;;  %p1457_p1 = scmp.lt.s32.totalorder %s1455_s14, %s1448_s2 }
  0x83   : > { %p1452_p13 = pneg %p1451_p5  ;;  %p1458_p7 = por %p1457_p1, %p1456_p8 }
  0x85   : > { %p1459_p11 = pnand %p1458_p7, %p1452_p13 }
  0x87   : > { %1462 = shalt.err (!%p1459_p11)
}
  0x88   : > { %1263 = dma.hbm_to_vmem [thread:$0]  (!%p1861_p3), %s1853_s25, 64, %s1855_s17, %s253_s26  }
  0x89   : > { %p2140_p2 = scmp.ne.s32.totalorder %s2119_s8, 0 }
  0x8a   : > { %s1892_s15 = sand.u32 (!%p2140_p2), 1, %s1570_s22   ;;  %p2141_p8 = scmp.ne.s32.totalorder (!%p2140_p2), %s2116_s6, 0 }
  0x8b   : > { %280 = sbr.rel (%p2140_p2) target bundleno = 872 (0x368), region = 40  ;;  %s1120_s7 = sshll.u32 (!%p2140_p2), %s1892_s15, 5 }
  0x8c   : > { %s283_s30 = scalar_lea.sflag (!%p2140_p2), [#allocation4], %s1892_s15  ;;  %s286_s5 = scalar_lea.vmem (!%p2140_p2), [#allocation3], %s1120_s7 }
  0x92   : > { %1537 = dma.done.wait (%p2141_p8), %s283_s30, 512  }
  0x93   : > { %1539 = vsyncadd (%p2141_p8), %s283_s30, 4294966784  ;;  %s291_s25 = sand.u32 1, %s1694_s29   ;;  %s293_s8 = sand.u32 1, %s1558_s19  }
  0x94   : > { %s1904_s17 = sshll.u32 %s293_s8, 2  ;;  %s292_s21 = scalar_lea.sflag [#allocation7], %s291_s25 }
  0x95   : > { %s295_s26 = scalar_lea.vmem [#allocation6], %s1904_s17 }
  0x96   : > { %1541 = dma.done.wait (%p1833_p12), %s292_s21, 64  }
  0x97   : > { %1543 = vsyncadd (%p1833_p12), %s292_s21, 4294967232  ;;  %p2142_p3 = scmp.eq.s32.totalorder %s1694_s29, 0 }
  0x99   : > { %1545 = dma.done.wait (%p2142_p3), [#allocation7], 192   ;;  %p2143_p10 = pmov %p2142_p3 }
  0x9a   : > { %vm368_vm0 = vcmask 1043456   ;;  %vm361_vm1 = vcmask 64512   ;;  %vm504_vm2 = vcmask 1041408   ;;  %v1369_v0 = vld [vmem:[%s286_s5 + $0x4] ss:$8 sps:$4 sm:$0xff]   ;;  %s1601_s6 = smov 124   ;;  %v623_v28 = vlaneseq }
  0x9b   : > { %1547 = vsyncadd (%p2143_p10), [#allocation7], 4294967104  ;;  %v1126_v1 = vld [vmem:[%s286_s5 + $0x14] sm:$0xf]  ;;  %v1127_v2 = vld [vmem:[%s286_s5 + $0x1c] sm:$0xf]  ;;  %493 = vrot.lane.b32.xlu0 %v1369_v0, %s1601_s6  ;;  %1183 = vmatprep.mubr.msk.bf16.mxu0 %vm361_vm1, %v1369_v0 }
  0x9c   : > { %v1129_v3 = vcombine.low %v1126_v1, %v1127_v2  ;;  %v1371_v4 = vld [vmem:[%s286_s5] ss:$8 sps:$4 sm:$0xff]   ;;  %v1372_v5 = vld [vmem:[%s286_s5 + $0x10] ss:$8 sps:$4 sm:$0xff]   ;;  %v348_v8 = vld [vmem:[#allocation8 + $0x4] sm:$0xf]  ;;  %v1142_v12 = vcombine.low %v1126_v1, %v1126_v1 }
  0x9d   : > { %v350_v6 = vld [vmem:[#allocation8 + $0x8] sm:$0xf]  ;;  %557 = vrot.lane.b32.xlu1 %v1371_v4, %s1601_s6  ;;  %v1137_v9 = vld [vmem:[%s2088_s3 + $0x4] sm:$0x3]  ;;  %v1136_v11 = vld [vmem:[%s2088_s3 + $0x2] sm:$0x3] }
  0x9e   : > { %1237 = vmatprep.subr.msk.bf16.mxu0 %vm368_vm0, %v350_v6  ;;  %v370_v7 = vsel %vm368_vm0, %v350_v6, 0  ;;  %1239 = vmatprep.subr.msk.bf16.mxu1 %vm504_vm2, %v1137_v9  ;;  %v506_v10 = vsel %vm504_vm2, %v1137_v9, 0  ;;  %v438_v13 = vsel %vm368_vm0, %v348_v8, 0  ;;  %v568_v14 = vsel %vm504_vm2, %v1136_v11, 0  ;;  %v698_v15 = vld [vmem:[%s2088_s3] sm:$0x3] }
  0x9f   : > { %1182 = vmatpush3.bf16.msra.mxu0 %v370_v7  ;;  %495 = vrot.lane.b32.xlu0 %v1129_v3, %s1601_s6  ;;  %v706_v16 = vsel %vm504_vm2, %v698_v15, 0  ;;  %vm497_vm3 = vcmask 31744   ;;  %v697_v20 = vld [vmem:[#allocation8] sm:$0xf]  ;;  %v624_v29 = vshrl.u32 %v623_v28, 7  ;;  %s1988_s16 = scalar_lea.vmem [#allocation9], %s1120_s7 }
  0xa0   : > { %1238 = vmatprep.subr.msk.bf16.mxu0 %vm368_vm0, %v348_v8  ;;  %1194 = vmatpush3.bf16.msra.mxu1 %v506_v10  ;;  %v773_v23 = vsel %vm368_vm0, %v697_v20, 0  ;;  %p1147_p12 = scmp.le.s32.totalorder %s1578_s24, 0 }
  0xa1   : > { %559 = vrot.lane.b32.xlu1 %v1372_v5, %s1601_s6  ;;  %1240 = vmatprep.subr.msk.bf16.mxu1 %vm504_vm2, %v1136_v11  ;;  %vm625_vm4 = vcmp.lt.s32.totalorder %v624_v29, 1  ;;  %v632_v35 = vadd.s32 24, %v624_v29  ;;  %v631_v38 = vadd.s32 16, %v624_v29  ;;  %v630_v39 = vadd.s32 8, %v624_v29  ;;  %s1604_s13 = smov (!%p1147_p12), 124  }
  0xa2   : > { %1184 = vmatmul.mubr.msk.bf16.vlgmr.msra.gmra.mrb[0].mxu0 %vm361_vm1, %v1129_v3  ;;  %v637_v44 = vand.u32 7, %v624_v29  ;;  %vm1603_vm9 = vmmov (!%p1147_p12), 0  }
  0xa3   : > { %1188 = vmatpush3.bf16.msra.mxu0 %v438_v13  ;;  %1189 = vmatprep.mubr.msk.bf16.mxu0 %vm361_vm1, %v1371_v4  ;;  %v658_v43 = vand.u32 7, %v632_v35  ;;  %v651_v46 = vand.u32 7, %v631_v38  ;;  %v644_v47 = vand.u32 7, %v630_v39 }
  0xa4   : > { %700 = vrot.lane.b32.xlu0 %v1142_v12, %s1601_s6  ;;  %1241 = vmatprep.subr.msk.bf16.mxu0 %vm504_vm2, %v698_v15  ;;  %vm1951_vm6 = vcmp.eq.s32.totalorder %v637_v44, 0 }
  0xa5   : > { %vm684_vm5 = vcmp.eq.s32.totalorder %v658_v43, 0  ;;  %vm1955_vm7 = vcmp.eq.s32.totalorder %v651_v46, 0  ;;  %vm1959_vm8 = vcmp.eq.s32.totalorder %v644_v47, 0 }
  0xae   : > { %1190 = vmatmul.mubr.msk.bf16.vlgmr.msra.gmra.mrb[0].mxu0 %vm361_vm1, %v1372_v5 }
  0xaf   : > { %1206 = vmatpush3.bf16.msra.mxu0 %v706_v16 }
 0x10d   : > { %v494_v17 = vpop.permute.xlu0 %493 }
 0x10e   : > { %1195 = vmatprep.mubr.msk.bf16.mxu1 %vm497_vm3, %v494_v17  ;;  %1207 = vmatprep.mubr.msk.bf16.mxu0 %vm497_vm3, %v494_v17 }
 0x10f   : > { %v558_v18 = vpop.permute.xlu1 %557 }
 0x111   : > { %v496_v19 = vpop.permute.xlu0 %495 }
 0x112   : > { %1196 = vmatmul.mubr.msk.bf16.vlgmr.msra.gmra.mrb[0].mxu1 %vm497_vm3, %v496_v19 }
 0x113   : > { %1200 = vmatpush3.bf16.msra.mxu1 %v568_v14  ;;  %1201 = vmatprep.mubr.msk.bf16.mxu1 %vm497_vm3, %v558_v18  ;;  %v560_v22 = vpop.permute.xlu1 %559 }
 0x114   : > { %1242 = vmatprep.subr.msk.bf16.mxu1 %vm368_vm0, %v697_v20 }
 0x116   : > { %v701_v21 = vpop.permute.xlu0 %700 }
 0x117   : > { %1208 = vmatmul.mubr.msk.bf16.vlgmr.msra.gmra.mrb[4].mxu0 %vm497_vm3, %v701_v21 }
 0x11e   : > { %1202 = vmatmul.mubr.msk.bf16.vlgmr.msra.gmra.mrb[0].mxu1 %vm497_vm3, %v560_v22  ;;  %v833_v22 = vld [vmem:[%s295_s26] sm:$0xf] (!%p1147_p12) }
 0x11f   : > { %1212 = vmatpush3.bf16.msra.mxu1 %v773_v23  ;;  %1213 = vmatprep.mubr.msk.bf16.mxu1 %vm361_vm1, %v1369_v0  ;;  %v835_v23 = vld [vmem:[%s2088_s3] sm:$0x3] (!%p1147_p12) }
 0x126   : > { %1214 = vmatmul.mubr.msk.bf16.vlgmr.msra.gmra.mrb[4].mxu1 %vm361_vm1, %v1142_v12 }
 0x181   : > { %v1191_v24 = vpop.f32.mrb[0].mxu0 }
 0x182   : > { %v474_v25 = vpop.f32.mrb[1].mxu0 }
 0x183   : > { %v1192_v26 = vpop.f32.mrb[2].mxu0 }
 0x184   : > { %v477_v27 = vpop.f32.mrb[3].mxu0 }
 0x1ea   : > { %v1209_v30 = vpop.f32.mrb[4].mxu0 }
 0x1eb   : > { %v762_v31 = vrot.slane %v1209_v30, 7  ;;  %v742_v32 = vpop.f32.mrb[5].mxu0 }
 0x1ec   : > { %v760_v33 = vrot.slane %v742_v32, 7  ;;  %v1210_v34 = vpop.f32.mrb[6].mxu0 }
 0x1ed   : > { %v745_v36 = vpop.f32.mrb[7].mxu0 }
 0x1ee   : > { %v761_v37 = vrot.slane %v745_v36, 7  ;;  %v765_v40 = vsel %vm625_vm4, %v762_v31, %v760_v33 }
 0x1ef   : > { %v766_v61 = vsel %vm1951_vm6, 0.0, %v765_v40 }
 0x1f0   : > { %v763_v41 = vsel %vm625_vm4, %v761_v37, %v762_v31  ;;  %v764_v42 = vsel %vm625_vm4, %v760_v33, %v761_v37 }
 0x1f1   : > { %v1203_v45 = vpop.f32.mrb[0].mxu1  ;;  %v768_v59 = vsel %vm1955_vm7, 0.0, %v763_v41  ;;  %v767_v11 = vsel %vm1959_vm8, 0.0, %v764_v42 }
 0x1f2   : > { %v604_v48 = vpop.f32.mrb[1].mxu1  ;;  %v621_v51 = vrot.slane %v1203_v45, 7 }
 0x1f3   : > { %v619_v49 = vrot.slane %v604_v48, 7  ;;  %v1204_v50 = vpop.f32.mrb[2].mxu1 }
 0x1f4   : > { %v622_v52 = vrot.slane %v1204_v50, 7  ;;  %v607_v53 = vpop.f32.mrb[3].mxu1 }
 0x1f5   : > { %v620_v55 = vrot.slane %v607_v53, 7 }
 0x1f6   : > { %v626_v58 = vsel %vm625_vm4, %v621_v51, %v622_v52  ;;  %v629_v60 = vsel %vm625_vm4, %v622_v52, %v619_v49 }
 0x1f7   : > { %v688_v62 = vsel %vm684_vm5, 0.0, %v626_v58  ;;  %v628_v63 = vsel %vm625_vm4, %v619_v49, %v620_v55  ;;  %v627_v0 = vsel %vm625_vm4, %v620_v55, %v621_v51  ;;  %v685_v1 = vsel %vm1951_vm6, 0.0, %v629_v60 }
 0x1f8   : > { %v692_v2 = vadd.f32 %v1192_v26, %v688_v62  ;;  %v687_v3 = vsel %vm1955_vm7, 0.0, %v627_v0  ;;  %v686_v4 = vsel %vm1959_vm8, 0.0, %v628_v63  ;;  %v689_v5 = vadd.f32 %v685_v1, %v474_v25 }
 0x1f9   : > { %v691_v6 = vadd.f32 %v1191_v24, %v687_v3  ;;  %v1215_v7 = vpop.f32.mrb[4].mxu1  ;;  %v690_v8 = vadd.f32 %v686_v4, %v477_v27  ;;  %v1148_v24 = vcombine.low (!%p1147_p12), %v833_v22, %v833_v22  ;;  %v1602_v25 = vmov (!%p1147_p12), 0.0   ;;  %v834_v27 = vld [vmem:[#allocation8] sm:$0xf] (!%p1147_p12) }
 0x1fa   : > { %696 = vst.msk [vmem:[#allocation2 + $0x18] sm:$0xff] %vm361_vm1, %v692_v2  ;;  %v818_v9 = vadd.f32 %v1215_v7, %v768_v59  ;;  %693 = vst.msk [vmem:[#allocation2] sm:$0xff] %vm361_vm1, %v689_v5  ;;  %v809_v10 = vpop.f32.mrb[5].mxu1  ;;  %1217 = vmatprep.subr.bf16.mxu0 (!%p1147_p12), %v1602_v25  ;;  %1223 = vmatprep.subr.bf16.mxu1 (!%p1147_p12), %v1602_v25  ;;  %v845_v26 = vsel (!%p1147_p12), %vm504_vm2, %v835_v23, 0  ;;  %v893_v28 = vsel (!%p1147_p12), %vm368_vm0, %v834_v27, 0 }
 0x1fb   : > { %695 = vst.msk [vmem:[#allocation2 + $0x10] sm:$0xff] %vm361_vm1, %v691_v6  ;;  %694 = vst.msk [vmem:[#allocation2 + $0x8] sm:$0xff] %vm361_vm1, %v690_v8  ;;  %v810_v12 = vadd.f32 %v809_v10, %v766_v61  ;;  %v1216_v13 = vpop.f32.mrb[6].mxu1  ;;  %1218 = vmatpush3.bf16.msra.mxu0 (!%p1147_p12), %v845_v26  ;;  %1219 = vmatprep.mubr.msk.bf16.mxu0 (!%p1147_p12), %vm1603_vm9, %v1602_v25 }
 0x1fc   : > { %v812_v14 = vpop.f32.mrb[7].mxu1  ;;  %839 = vrot.lane.b32.xlu0 (!%p1147_p12), %v1148_v24, %s1604_s13  ;;  %1224 = vmatpush3.bf16.msra.mxu1 (!%p1147_p12), %v893_v28 }
 0x1fd   : > { %v813_v15 = vadd.f32 %v812_v14, %v767_v11  ;;  %1225 = vmatprep.mubr.msk.bf16.mxu1 (!%p1147_p12), %vm1603_vm9, %v1602_v25 }
 0x1ff   : > { %832 = sbr.rel (%p1147_p12) target bundleno = 843 (0x34b), region = 56  ;;  %1226 = vmatmul.mubr.msk.bf16.vlgmr.msra.gmra.mrb[0].mxu1 (!%p1147_p12), %vm361_vm1, %v833_v22 }
 0x201   : > { %v759_v16 = vld [vmem:[#allocation2 + $0x18] sm:$0xff]  ;;  %v935_v39 = vld [vmem:[#allocation2] sm:$0xff] (!%p1147_p12) }
 0x202   : > { %v825_v17 = vadd.f32 %v818_v9, %v759_v16  ;;  %v757_v18 = vld [vmem:[#allocation2 + $0x8] sm:$0xff]  ;;  %v758_v19 = vld [vmem:[#allocation2 + $0x10] sm:$0xff] }
 0x203   : > { %v823_v20 = vadd.f32 %v810_v12, %v757_v18  ;;  %v824_v21 = vadd.f32 %v813_v15, %v758_v19 }
 0x204   : > { %828 = vst.msk [vmem:[#allocation2 + $0x18] sm:$0xff] %vm361_vm1, %v825_v17 }
 0x205   : > { %826 = vst.msk [vmem:[#allocation2 + $0x8] sm:$0xff] %vm361_vm1, %v823_v20  ;;  %827 = vst.msk [vmem:[#allocation2 + $0x10] sm:$0xff] %vm361_vm1, %v824_v21 }
 0x26e   : > { %v840_v29 = vpop.permute.xlu0 %839 }
 0x26f   : > { %1220 = vmatmul.mubr.msk.bf16.vlgmr.msra.gmra.mrb[0].mxu0 %vm497_vm3, %v840_v29 }
 0x2d2   : > { %v929_v30 = vpop.f32.mrb[0].mxu1 }
 0x2d3   : > { %v1227_v31 = vpop.f32.mrb[1].mxu1 }
 0x2d4   : > { %v932_v32 = vpop.f32.mrb[2].mxu1 }
 0x2d5   : > { %v1228_v33 = vpop.f32.mrb[3].mxu1 }
 0x342   : > { %v881_v34 = vpop.f32.mrb[0].mxu0 }
 0x343   : > { %v887_v35 = vrot.slane %v881_v34, 7  ;;  %v1221_v36 = vpop.f32.mrb[1].mxu0 }
 0x344   : > { %v884_v37 = vpop.f32.mrb[2].mxu0 }
 0x345   : > { %v888_v38 = vsel %vm1951_vm6, 0.0, %v887_v35  ;;  %v1222_v40 = vpop.f32.mrb[3].mxu0 }
 0x346   : > { %v930_v41 = vadd.f32 %v929_v30, %v888_v38 }
 0x348   : > { %v936_v42 = vadd.f32 %v935_v39, %v930_v41 }
 0x34a   : > { %937 = vst.msk [vmem:[#allocation2] sm:$0xff] %vm361_vm1, %v936_v42 }
 0x34b PF: > { %s2150_s30 = sld [smem:[#allocation16_spill]]  ;;  %v1151_v43 = vld [vmem:[%s2089_s4] ss:$0 sm:$0xff]  ;;  %s1153_s5 = sshll.u32 %s1578_s24, 2 }
 0x34c   : > { %s2151_s25 = sld [smem:[#allocation19_spill]]  ;;  %s973_s17 = sshll.u32 %s1988_s16, 4  ;;  %s2009_s17 = int_to_ptr.vmem [resolvable:$true] %s973_s17 }
 0x34d   : > { %s2152_s0 = sld [smem:[#allocation25_spill]]  ;;  %s958_s23 = scalar_lea.sflag [#allocation5], %s1892_s15 }
 0x34e   : > { %s1464_s10 = scalar_lea.vmem %s2009_s17, 512  ;;  %s1605_s12 = smov [#allocation9]  }
 0x34f   : > { %p1465_p0 = scmp.ne.s32.totalorder %s2009_s17, %s1464_s10  ;;  %s1468_s9 = sshll.u32 %s1605_s12, 4  ;;  %s1469_s9 = int_to_ptr.vmem [resolvable:$false] %s1468_s9 }
 0x350   : > { %v942_v49 = vld [vmem:[#allocation2 + $0x18] sm:$0xff]  ;;  %s1470_s2 = scalar_lea.vmem %s1469_s9, 1024  ;;  %p1471_p5 = scmp.lt.s32.totalorder %s2009_s17, %s1469_s9 }
 0x351   : > { %v939_v44 = vld [vmem:[#allocation2] sm:$0xff]  ;;  %v940_v45 = vld [vmem:[#allocation2 + $0x8] sm:$0xff]  ;;  %v941_v48 = vld [vmem:[#allocation2 + $0x10] sm:$0xff]  ;;  %s1154_s8 = sshll.u32 %s2150_s30, 3  ;;  %v952_v51 = vadd.f32 %v1151_v43, %v942_v49  ;;  %p1472_p13 = scmp.lt.s32.totalorder %s1470_s2, %s1464_s10 }
 0x352   : > { %v949_v46 = vadd.f32 %v1151_v43, %v939_v44  ;;  %v950_v47 = vadd.f32 %v1151_v43, %v940_v45  ;;  %v951_v50 = vadd.f32 %v1151_v43, %v941_v48  ;;  %s970_s21 = sadd.s32 %s1154_s8, %s1153_s5  ;;  %p2153_p4 = scmp.ne.s32.totalorder %s2151_s25, 0 }
 0x353   : > { %s1155_s24 = sshll.u32 %s970_s21, 7  ;;  %956 = vst.msk [vmem:[%s1988_s16 + $0x18] sm:$0xff] %vm361_vm1, %v952_v51  ;;  %p1473_p1 = por %p1472_p13, %p1471_p5 }
 0x354   : > { %953 = vst.msk [vmem:[%s1988_s16] sm:$0xff] %vm361_vm1, %v949_v46  ;;  %954 = vst.msk [vmem:[%s1988_s16 + $0x8] sm:$0xff] %vm361_vm1, %v950_v47  ;;  %s2022_s29 = scalar_lea.hbm %s2152_s0, %s1155_s24  ;;  %p1466_p6 = pnand %p1465_p0, %p2153_p4 }
 0x355   : > { %955 = vst.msk [vmem:[%s1988_s16 + $0x10] sm:$0xff] %vm361_vm1, %v951_v50 }
 0x356   : > { %p1467_p9 = pneg %p1466_p6 }
 0x358   : > { %p1474_p7 = pnand %p1473_p1, %p1467_p9 }
 0x35a   : > { %1477 = shalt.err (!%p1474_p7)
}
 0x35b   : > { %s1478_s16 = scalar_lea.hbm %s2022_s29, 512  ;;  %s1482_s14 = scalar_lea.hbm %s2152_s0, 2048 }
 0x35c   : > { %p1479_p11 = scmp.ne.s32.totalorder %s2022_s29, %s1478_s16  ;;  %p1483_p3 = scmp.lt.u32.totalorder %s2022_s29, %s2152_s0 }
 0x35d   : > { %p1484_p10 = scmp.lt.u32.totalorder %s1482_s14, %s1478_s16  ;;  %p1486_p0 = scmp.lt.u32.totalorder %s1478_s16, %s2022_s29 }
 0x35e   : > { %p1480_p2 = pnand %p1479_p11, %p2153_p4 }
 0x35f   : > { %p1485_p12 = por %p1484_p10, %p1483_p3 }
 0x360   : > { %p1481_p8 = pneg %p1480_p2 }
 0x361   : > { %p1487_p6 = por %p1486_p0, %p1485_p12 }
 0x363   : > { %p1488_p9 = pnand %p1487_p6, %p1481_p8 }
 0x365   : > { %1491 = shalt.err (!%p1488_p9)
}
 0x366   : > { %s1606_s5 = smov 128   ;;  %s1607_s8 = smov 8  }
 0x367   : > { %1251 = dma.vmem_to_hbm [thread:$0]  (%p2153_p4), %s2009_s17, 512, %s2022_s29, %s958_s23, %s1606_s5, %s1606_s5, %s1607_s8  }
 0x368 PF: > { %s2154_s21 = sld [smem:[#allocation14_spill]]  ;;  %s2155_s24 = sld [smem:[#allocation18_spill]] }
 0x369   : > { %p1271_p5 = scmp.ge.s32.totalorder %s1594_s28, 2 }
 0x36e   : > { %s988_s26 = sand.u32 1, %s2154_s21   ;;  %p2156_p13 = scmp.ne.s32.totalorder %s2155_s24, 0 }
 0x36f   : > { %s989_s6 = scalar_lea.sflag [#allocation5], %s988_s26 }
 0x370   : > { %p1265_p1 = pnand %p1271_p5, %p2156_p13 }
 0x372   : > { %1549 = dma.done.wait (!%p1265_p1), %s989_s6, 512  }
 0x373   : > { %1551 = vsyncadd (!%p1265_p1), %s989_s6, 4294966784  ;;  %s24_s28 = sadd.s32 1, %s1594_s28   ;;  %s2157_s15 = sld [smem:[#allocation15_spill]] }
 0x374   : > { %p21_p7 = scmp.ge.s32.totalorder %s24_s28, 6   ;;  %s2158_s23 = sld [smem:[#allocation22_spill]] }
 0x375   : > { %s2159_s24 = sld [smem:[#allocation17_spill]]  ;;  %s2160_s26 = sld [smem:[#allocation20_spill]] }
 0x376   : > { %s2161_s17 = sld [smem:[#allocation21_spill]]  ;;  %s2162_s18 = smov %s1558_s19 }
 0x377   : > { %s2163_s19 = smov %s1562_s20  ;;  %s2164_s20 = smov %s1846_s11 }
 0x378   : > { %s2165_s21 = smov %s1570_s22  ;;  %s2167_s25 = smov %s1590_s27 }
 0x379   : > { %s2166_s22 = smov %s2157_s15  ;;  %23 = sbr.rel (!%p21_p7) target bundleno = 15 (0xf), region = 112 }
 0x37c   : > { %s2168_s27 = smov %s2161_s17 }
 0x380   :  { %994 = vsyncpa [#allocation4], 1 }
 0x381   :  { %996 = vsyncpa [#allocation4 + $0x1], 1 }
 0x382   :  { %997 = vsyncpa [#allocation7], 1 }
 0x383   :  { %999 = vsyncpa [#allocation7 + $0x1], 1 }
 0x384   :  { %1000 = vsyncpa [#allocation5], 1 }
 0x385   :  { %1002 = vsyncpa [#allocation5 + $0x1], 1 }

</bundles_post_ra>
